<compile_context>
chip_gen: v6e
topology: v6e:2x2x1
jax: 0.10.0
libtpu: 0.0.40
codegen_flags: <defaults>
</compile_context>

<pallas_src>
import jax
import jax.numpy as jnp
from jax import lax
from jax.experimental import pallas as pl
from jax.experimental.pallas import tpu as pltpu


# --------------------------------------------------------------------------- #
# Kernel
# --------------------------------------------------------------------------- #
def _logreg_kernel(x_ref, w_ref, b_ref, o_ref, acc_ref):
    """One (tm x N_pad) output tile; K is reduced over grid axis 1."""
    k = pl.program_id(1)

    @pl.when(k == 0)
    def _():
        acc_ref[...] = jnp.zeros_like(acc_ref)

    # MXU matmul, f32 accumulation.
    acc_ref[...] += jnp.dot(
        x_ref[...], w_ref[...], preferred_element_type=jnp.float32
    )

    @pl.when(k == pl.num_programs(1) - 1)
    def _():
        logits = acc_ref[...] + b_ref[...]          # (1, N_pad) broadcast
        o_ref[...] = jax.nn.sigmoid(logits).astype(o_ref.dtype)   # EUP


# --------------------------------------------------------------------------- #
# Parameter preparation (done once, outside the hot path)
# --------------------------------------------------------------------------- #
def prepare_params(weight, bias, lane=128):
    """weight: (output_size, input_size), bias: (output_size,).
    Returns (K, N_pad) transposed+zero-padded weight and (1, N_pad) bias."""
    n_out, k_in = weight.shape
    n_pad = ((n_out + lane - 1) // lane) * lane
    wt = jnp.zeros((k_in, n_pad), weight.dtype).at[:, :n_out].set(weight.T)
    b2 = jnp.zeros((1, n_pad), bias.dtype).at[:, :n_out].set(bias[None, :])
    return wt, b2


def _choose_tile(dim, preferred, multiple):
    """Largest tile <= preferred that divides `dim` and is a multiple of
    `multiple`; falls back to the full extent (always legal)."""
    if dim <= preferred:
        return dim
    t = (preferred // multiple) * multiple
    while t >= multiple:
        if dim % t == 0:
            return t
        t -= multiple
    return dim


# --------------------------------------------------------------------------- #
# Wrapper
# --------------------------------------------------------------------------- #
def logistic_regression(x, wt_padded, b_padded, output_size):
    """x: (B, K); wt_padded: (K, N_pad); b_padded: (1, N_pad).
    Returns sigmoid(x @ W.T + b) with shape (B, output_size)."""
    B, K = x.shape
    K2, N_pad = wt_padded.shape
    assert K == K2 and N_pad % 128 == 0

    tm = _choose_tile(B, 512, 8)      # batch tile (sublane-aligned)
    tk = _choose_tile(K, 512, 128)    # reduction tile (lane-aligned)

    grid = (B // tm, K // tk)         # batch axis first, reduction last

    itemsize = jnp.dtype(x.dtype).itemsize
    cost = pl.CostEstimate(
        flops=2 * B * K * N_pad,
        transcendentals=B * N_pad,
        bytes_accessed=itemsize * (B * K + K * N_pad + B * N_pad),
    )

    out_padded = pl.pallas_call(
        _logreg_kernel,
        out_shape=jax.ShapeDtypeStruct((B, N_pad), x.dtype),
        grid_spec=pltpu.PrefetchScalarGridSpec(
            num_scalar_prefetch=0,
            grid=grid,
            in_specs=[
                pl.BlockSpec((tm, tk), lambda i, k: (i, k)),     # x tile
                pl.BlockSpec((tk, N_pad), lambda i, k: (k, 0)),  # W^T tile
                pl.BlockSpec((1, N_pad), lambda i, k: (0, 0)),   # bias (resident)
            ],
            out_specs=pl.BlockSpec((tm, N_pad), lambda i, k: (i, 0)),
            scratch_shapes=[pltpu.VMEM((tm, N_pad), jnp.float32)],
        ),
        compiler_params=pltpu.CompilerParams(
            dimension_semantics=("parallel", "arbitrary"),
            vmem_limit_bytes=64 << 20,
        ),
        cost_estimate=cost,
    )(x, wt_padded, b_padded)

    return out_padded[:, :output_size]


# --------------------------------------------------------------------------- #
# Test
# --------------------------------------------------------------------------- #
if __name__ == "__main__":
    # Small shapes implied by the module: batch=8, input_size=32, output_size=16.
    B, INPUT_SIZE, OUTPUT_SIZE = 8, 32, 16

    key = jax.random.PRNGKey(0)
    kx, kw, kb = jax.random.split(key, 3)

    x = jax.random.normal(kx, (B, INPUT_SIZE), dtype=jnp.float32)
    # Deterministic init matching nn.Linear shapes: W (out, in), b (out,)
    bound = 1.0 / (INPUT_SIZE ** 0.5)
    weight = jax.random.uniform(kw, (OUTPUT_SIZE, INPUT_SIZE),
                                minval=-bound, maxval=bound, dtype=jnp.float32)
    bias = jax.random.uniform(kb, (OUTPUT_SIZE,),
                              minval=-bound, maxval=bound, dtype=jnp.float32)

    # One-time param transform (init-time in a real model).
    wt_p, b_p = prepare_params(weight, bias)

    out = logistic_regression(x, wt_p, b_p, OUTPUT_SIZE)
    out = jax.block_until_ready(out)

    # Reference check in plain JAX.
    ref = jax.nn.sigmoid(x @ weight.T + bias)
    assert out.shape == (B, OUTPUT_SIZE)
    assert jnp.allclose(out, ref, atol=1e-5, rtol=1e-5)

    print("KERNEL_OK")
</pallas_src>

<mosaic_0001>
module attributes {stable_mosaic.version = 11 : i64} {
  func.func @_logreg_kernel(%arg0: i32, %arg1: i32, %arg2: memref<8x32xf32, #tpu.memory_space<vmem>>, %arg3: memref<32x128xf32, #tpu.memory_space<vmem>>, %arg4: memref<1x128xf32, #tpu.memory_space<vmem>>, %arg5: memref<8x128xf32, #tpu.memory_space<vmem>>, %arg6: memref<8x128xf32, #tpu.memory_space<vmem>>) attributes {dimension_semantics = [#tpu.dimension_semantics<parallel>, #tpu.dimension_semantics<arbitrary>], iteration_bounds = array<i64: 1, 1>, scalar_prefetch = 0 : i64, scratch_operands = 1 : i64, tpu.core_type = #tpu.core_type<tc>, window_params = [{transform_indices = @transform_0, window_bounds = array<i64: 8, 32>}, {transform_indices = @transform_1, window_bounds = array<i64: 32, 128>}, {pipeline_mode = #tpu.pipeline_mode<synchronous>, transform_indices = @transform_2, window_bounds = array<i64: 1, 128>}, {transform_indices = @transform_3, window_bounds = array<i64: 8, 128>}]} {
    %c0_i32 = arith.constant 0 : i32
    %0 = arith.cmpi eq, %arg1, %c0_i32 : i32
    %1 = arith.extui %0 : i1 to i32
    %c0_i32_0 = arith.constant 0 : i32
    %2 = arith.cmpi ne, %1, %c0_i32_0 : i32
    scf.if %2 {
      %cst_10 = arith.constant 0.000000e+00 : f32
      %12 = vector.broadcast %cst_10 : f32 to vector<8x128xf32>
      %c0_11 = arith.constant 0 : index
      %c0_12 = arith.constant 0 : index
      %13 = vector.load %arg6[%c0_11, %c0_12] : memref<8x128xf32, #tpu.memory_space<vmem>>, vector<8x128xf32>
      tpu.vector_store %arg6[%c0_11, %c0_12], %12 {strides = array<i32>} : memref<8x128xf32, #tpu.memory_space<vmem>>, vector<8x128xf32>,
    } else {
    }
    %c0 = arith.constant 0 : index
    %c0_1 = arith.constant 0 : index
    %3 = vector.load %arg6[%c0, %c0_1] : memref<8x128xf32, #tpu.memory_space<vmem>>, vector<8x128xf32>
    %c0_2 = arith.constant 0 : index
    %c0_3 = arith.constant 0 : index
    %4 = vector.load %arg2[%c0_2, %c0_3] : memref<8x32xf32, #tpu.memory_space<vmem>>, vector<8x32xf32>
    %c0_4 = arith.constant 0 : index
    %c0_5 = arith.constant 0 : index
    %5 = vector.load %arg3[%c0_4, %c0_5] : memref<32x128xf32, #tpu.memory_space<vmem>>, vector<32x128xf32>
    %cst = arith.constant dense<0.000000e+00> : vector<8x128xf32>
    %6 = tpu.matmul %4, %5, %cst {dimension_numbers = #tpu.dot_dimension_numbers<[1], [0], [0], [1], [0, 0, 1, 1], [], []>} : vector<8x32xf32>, vector<32x128xf32>, vector<8x128xf32> -> vector<8x128xf32>
    %7 = arith.addf %3, %6 : vector<8x128xf32>
    %c0_6 = arith.constant 0 : index
    %c0_7 = arith.constant 0 : index
    %8 = vector.load %arg6[%c0_6, %c0_7] : memref<8x128xf32, #tpu.memory_space<vmem>>, vector<8x128xf32>
    tpu.vector_store %arg6[%c0_6, %c0_7], %7 {strides = array<i32>} : memref<8x128xf32, #tpu.memory_space<vmem>>, vector<8x128xf32>,
    %c0_i32_8 = arith.constant 0 : i32
    %9 = arith.cmpi eq, %arg1, %c0_i32_8 : i32
    %10 = arith.extui %9 : i1 to i32
    %c0_i32_9 = arith.constant 0 : i32
    %11 = arith.cmpi ne, %10, %c0_i32_9 : i32
    scf.if %11 {
      %c0_10 = arith.constant 0 : index
      %c0_11 = arith.constant 0 : index
      %12 = vector.load %arg6[%c0_10, %c0_11] : memref<8x128xf32, #tpu.memory_space<vmem>>, vector<8x128xf32>
      %c0_12 = arith.constant 0 : index
      %c0_13 = arith.constant 0 : index
      %13 = vector.load %arg4[%c0_12, %c0_13] : memref<1x128xf32, #tpu.memory_space<vmem>>, vector<1x128xf32>
      %14 = vector.broadcast %13 : vector<1x128xf32> to vector<8x128xf32>
      %15 = arith.addf %12, %14 : vector<8x128xf32>
      %16 = arith.negf %15 : vector<8x128xf32>
      %17 = math.exp %16 : vector<8x128xf32>
      %cst_14 = arith.constant 1.000000e+00 : f32
      %18 = vector.broadcast %cst_14 : f32 to vector<8x128xf32>
      %19 = arith.addf %18, %17 : vector<8x128xf32>
      %20 = arith.divf %18, %19 : vector<8x128xf32>
      %c0_15 = arith.constant 0 : index
      %c0_16 = arith.constant 0 : index
      %21 = vector.load %arg5[%c0_15, %c0_16] : memref<8x128xf32, #tpu.memory_space<vmem>>, vector<8x128xf32>
      tpu.vector_store %arg5[%c0_15, %c0_16], %20 {strides = array<i32>} : memref<8x128xf32, #tpu.memory_space<vmem>>, vector<8x128xf32>,
    } else {
    }
    return
  }
  func.func @transform_0(%arg0: i32, %arg1: i32) -> (i32, i32) {
    %c0_i32 = arith.constant 0 : i32
    return %arg0, %arg1 : i32, i32
  }
  func.func @transform_1(%arg0: i32, %arg1: i32) -> (i32, i32) {
    %c0_i32 = arith.constant 0 : i32
    %c0_i32_0 = arith.constant 0 : i32
    return %arg1, %c0_i32 : i32, i32
  }
  func.func @transform_2(%arg0: i32, %arg1: i32) -> (i32, i32) {
    %c0_i32 = arith.constant 0 : i32
    %c0_i32_0 = arith.constant 0 : i32
    %c0_i32_1 = arith.constant 0 : i32
    return %c0_i32, %c0_i32_0 : i32, i32
  }
  func.func @transform_3(%arg0: i32, %arg1: i32) -> (i32, i32) {
    %c0_i32 = arith.constant 0 : i32
    %c0_i32_0 = arith.constant 0 : i32
    return %arg0, %c0_i32 : i32, i32
  }
}

</mosaic_0001>

<bundles_post_ra>
// kernel: tpu_custom_call.1
= control target key start
LH: loop header
LB: loop body
LE: loop exit
PB: predicated region body
PF: predicated region fallthrough
CT: control target
= control target key end

     0   :  { %8 = vsyncpa [#allocation4], 0  ;;  %s298_s0 = inlined_call_operand.hbm [shape: f32[8,32], index: 0, kind: input, shape index: {}]   ;;  %s299_s1 = inlined_call_operand.hbm [shape: f32[32,128], index: 1, kind: input, shape index: {}]   ;;  %s300_s2 = inlined_call_operand.vmem [shape: f32[1,128], index: 2, kind: input, shape index: {}]   ;;  %s301_s3 = inlined_call_operand.hbm [shape: f32[8,128], index: 3, kind: output, shape index: {}]  }
   0x1   :  { %9 = vsyncpa [#allocation7], 0 }
   0x2   :  { %10 = vsyncpa [#allocation5], 0  ;;  %s259_s12 = smov [#allocation3]   ;;  %s260_s14 = smov [#allocation6]  }
   0x3   :  { %s17_s13 = sshll.u32 %s259_s12, 4  ;;  %s26_s15 = sshll.u32 %s260_s14, 4  ;;  %s18_s13 = int_to_ptr.vmem [resolvable:$true] %s17_s13  ;;  %s27_s15 = int_to_ptr.vmem [resolvable:$true] %s26_s15 }
   0x4   :  { %s201_s16 = scalar_lea.vmem %s18_s13, 128  ;;  %p206_p1 = scmp.lt.s32.totalorder %s18_s13, %s18_s13 }
   0x5   :  { %p202_p0 = scmp.ne.s32.totalorder %s18_s13, %s201_s16  ;;  %p207_p2 = scmp.lt.s32.totalorder %s201_s16, %s201_s16 }
   0x7   :  { %p208_p3 = por %p207_p2, %p206_p1 }
   0x9   :  { %p209_p4 = pnand %p208_p3, %p202_p0 }
   0xb   :  { %212 = shalt.err (!%p209_p4)
}
   0xc   :  { %20 = dma.hbm_to_vmem [thread:$0]  %s298_s0, 128, %s18_s13, [#allocation4]  }
   0xd   :  { %s221_s19 = scalar_lea.vmem %s27_s15, 512  ;;  %p226_p6 = scmp.lt.s32.totalorder %s27_s15, %s27_s15 }
   0xe   :  { %p222_p5 = scmp.ne.s32.totalorder %s27_s15, %s221_s19  ;;  %p227_p7 = scmp.lt.s32.totalorder %s221_s19, %s221_s19 }
  0x10   :  { %p228_p8 = por %p227_p7, %p226_p6 }
  0x12   :  { %p229_p9 = pnand %p228_p8, %p222_p5 }
  0x14   :  { %232 = shalt.err (!%p229_p9)
}
  0x15   :  { %s261_s20 = smov 128   ;;  %s262_s21 = smov 8  }
  0x16   :  { %32 = dma.hbm_to_vmem [thread:$0]  %s299_s1, 512, %s27_s15, [#allocation7], %s261_s20, %s261_s20, %s262_s21  }
  0x17   :  { %253 = dma.done.wait [#allocation4], 128  }
  0x18   :  { %254 = vsyncadd [#allocation4], 4294967168 }
  0x19   :  { %255 = dma.done.wait [#allocation7], 512  }
  0x1a   :  { %256 = vsyncadd [#allocation7], 4294966784  ;;  %v263_v0 = vmov 0.0   ;;  %vm264_vm0 = vmmov 0   ;;  %v51_v1 = vld [vmem:[#allocation6 + $0x18] sm:$0xff]  ;;  %v50_v2 = vld [vmem:[#allocation6 + $0x10] sm:$0xff] }
  0x1b   :  { %171 = vmatprep.subr.mxu0 %v263_v0  ;;  %179 = vmatprep.mubr.msk.f32.mxu0 %vm264_vm0, %v263_v0  ;;  %v49_v3 = vld [vmem:[#allocation6 + $0x8] sm:$0xff]  ;;  %v48_v4 = vld [vmem:[#allocation6] sm:$0xff]  ;;  %v47_v5 = vld [vmem:[#allocation3] sm:$0xff]  ;;  %vm52_vm1 = vcmask 261120   ;;  %s265_s24 = smov [#allocation8]  }
  0x1c   :  { %172 = vmatpush3.msra.mxu0 %v51_v1  ;;  %v164_v6 = vld [vmem:[%s300_s2] ss:$0 sm:$0xff]  ;;  %s153_s25 = sshll.u32 %s265_s24, 4  ;;  %s154_s25 = int_to_ptr.vmem [resolvable:$true] %s153_s25 }
  0x1d   :  { %173 = vmatprep.subr.mxu0 %v263_v0  ;;  %s233_s26 = scalar_lea.vmem %s154_s25, 128  ;;  %p238_p11 = scmp.lt.s32.totalorder %s154_s25, %s154_s25 }
  0x1e   :  { %174 = vmatpush3.msra.mxu0 %v50_v2  ;;  %p234_p10 = scmp.ne.s32.totalorder %s154_s25, %s233_s26  ;;  %p239_p12 = scmp.lt.s32.totalorder %s233_s26, %s233_s26 }
  0x1f   :  { %175 = vmatprep.subr.mxu0 %v263_v0 }
  0x20   :  { %176 = vmatpush3.msra.mxu0 %v49_v3  ;;  %p240_p13 = por %p239_p12, %p238_p11 }
  0x21   :  { %177 = vmatprep.subr.mxu0 %v263_v0 }
  0x22   :  { %178 = vmatpush3.msra.mxu0 %v48_v4  ;;  %p241_p0 = pnand %p240_p13, %p234_p10 }
  0x23   :  { %180 = vmatmul.mubr.msk.f32.vlgmr.msra.gmra.mxu0 %vm52_vm1, %v47_v5 }
  0xe3   :  { %v122_v7 = vpop.f32.mrf.mxu0 }
  0xe4   :  { %v139_v8 = vadd.f32 %v164_v6, %v122_v7 }
  0xe5   :  { %v181_v9 = vpop.f32.mrf.mxu0 }
  0xe6   :  { %v165_v10 = vmul.f32 -1.442695, %v139_v8 }
  0xe8   :  { %189 = vpow2.f32 %v165_v10 }
  0xf5   :  { %v190_v11 = vpop.eup %189 }
  0xf6   :  { %v143_v12 = vadd.f32 1.0, %v190_v11 }
  0xf8   :  { %191 = vrcp.f32 %v143_v12 }
 0x105   :  { %v192_v13 = vpop.eup %191 }
 0x106   :  { %146 = vst [vmem:[#allocation8] sm:$0xff] %v192_v13 }
 0x107   :  { %244 = shalt.err (!%p241_p0)
}
 0x108   :  { %156 = dma.vmem_to_hbm [thread:$0]  %s154_s25, 128, %s301_s3, [#allocation5]  }
 0x109   :  { %257 = dma.done.wait [#allocation5], 128  }
 0x10a   :  { %258 = vsyncadd [#allocation5], 4294967168 }
 0x10b   :  { %160 = vsyncpa [#allocation4], 1 }
 0x10c   :  { %161 = vsyncpa [#allocation7], 1 }
 0x10d   :  { %162 = vsyncpa [#allocation5], 1 }

</bundles_post_ra>
